<compile_context>
chip_gen: v5e
topology: v5e:2x2
jax: 0.10.0
libtpu: 0.0.40
codegen_flags: <defaults>
</compile_context>

<pallas_src>
import functools

import jax
import jax.numpy as jnp
from jax.experimental import pallas as pl
from jax.experimental.pallas import tpu as pltpu


def _round_up(x, m):
    return (x + m - 1) // m * m


def _pick_tile_b(batch):
    """Per-generation batch-tile size (rows per grid step), multiple of 8."""
    bp8 = _round_up(batch, 8)
    try:
        kind = jax.devices()[0].device_kind.lower()
    except Exception:
        kind = ""
    if "v6" in kind or "trillium" in kind:
        cap = 1024      # 128 MiB VMEM: big tiles amortize per-step grid overhead
    elif "v5 lite" in kind or "v5e" in kind or "v5lite" in kind:
        cap = 512       # lowest default scoped VMEM / HBM BW
    else:
        cap = 512       # v7x: 64 MiB physical VMEM -> keep tiles modest (also default)
    return min(cap, bp8)


# --------------------------------------------------------------------------- #
# Pass 1: per-channel BatchNorm statistics (mean, biased var) over the batch. #
# --------------------------------------------------------------------------- #
def _stats_kernel(nb_ref, seq_ref, w1_ref, b1_ref, mean_ref, var_ref,
                  mean_acc, m2_acc, *, matmul_dtype):
    tb, L, D = seq_ref.shape
    H = w1_ref.shape[1]
    t = pl.program_id(0)
    n_tiles = pl.num_programs(0)
    n_valid = nb_ref[0]                                   # true (un-padded) batch size

    # h = LeakyReLU(seq @ W1 + b1), channel-major so every BN channel owns a
    # contiguous, sublane-aligned block of tb rows -> one flat 2-D MXU matmul.
    seq_cm = pltpu.einshape("bld->lbd", seq_ref[...])     # (L, tb, D)
    x = seq_cm.reshape(L * tb, D)
    h = jnp.dot(x.astype(matmul_dtype), w1_ref[...].astype(matmul_dtype),
                preferred_element_type=jnp.float32) + b1_ref[...]
    h = jnp.where(h >= 0, h, 128.0 * h)                   # LeakyReLU(slope=128)
    h3 = h.reshape(L, tb, H)

    # Rows of this tile that are real (not batch padding).
    rows_t = jnp.minimum(n_valid - t * tb, tb)            # scalar int32
    row_mask = (jax.lax.broadcasted_iota(jnp.int32, (1, tb, 1), 1)
                < rows_t).astype(jnp.float32)             # (1, tb, 1)

    n_t = (rows_t * H).astype(jnp.float32)                # elements this tile
    n_prev = (jnp.minimum(n_valid, t * tb) * H).astype(jnp.float32)

    # Tile-local mean / M2 per channel; padding masked AFTER the lane reduction.
    s = jnp.sum(h3, axis=2, keepdims=True) * row_mask     # (L, tb, 1)
    m_t = jnp.sum(s, axis=1, keepdims=True) / n_t         # (L, 1, 1)
    d = h3 - m_t
    sq = jnp.sum(d * d, axis=2, keepdims=True) * row_mask  # (L, tb, 1)
    m2_t = jnp.sum(sq, axis=1, keepdims=True)              # (L, 1, 1)
    m_t = m_t.reshape(L, 1)
    m2_t = m2_t.reshape(L, 1)

    @pl.when(t == 0)
    def _():
        mean_acc[...] = m_t
        m2_acc[...] = m2_t

    @pl.when(t > 0)
    def _():
        n_ab = n_prev + n_t
        delta = m_t - mean_acc[...]
        mean_acc[...] = mean_acc[...] + delta * (n_t / n_ab)
        m2_acc[...] = m2_acc[...] + m2_t + (delta * delta) * (n_prev * n_t / n_ab)

    @pl.when(t == n_tiles - 1)
    def _():
        n_tot = n_valid.astype(jnp.float32) * H
        mean_ref[...] = mean_acc[...]
        var_ref[...] = m2_acc[...] / n_tot                 # biased var (torch training)


# --------------------------------------------------------------------------- #
# Pass 2: recompute h per tile, fold BN affine through W2, running max over L. #
# --------------------------------------------------------------------------- #
def _apply_kernel(seq_ref, w1_ref, b1_ref, w2_ref, scale_ref, bias_ref, out_ref,
                  *, matmul_dtype):
    tb, L, D = seq_ref.shape
    Np = w2_ref.shape[1]

    seq_cm = pltpu.einshape("bld->lbd", seq_ref[...])      # (L, tb, D)
    w1 = w1_ref[...].astype(matmul_dtype)
    w2 = w2_ref[...].astype(matmul_dtype)
    b1 = b1_ref[...]
    scale = scale_ref[...]                                 # (L, 1)
    bias = bias_ref[...]                                   # (L, Np)

    acc = jnp.full((tb, Np), -jnp.inf, dtype=jnp.float32)
    for l in range(L):                                     # static unroll, L == 17
        h = jnp.dot(seq_cm[l].astype(matmul_dtype), w1,
                    preferred_element_type=jnp.float32) + b1        # (tb, H)
        h = jnp.where(h >= 0, h, 128.0 * h)
        p = jnp.dot(h.astype(matmul_dtype), w2,
                    preferred_element_type=jnp.float32)             # (tb, Np)
        o = p * scale[l:l + 1, :] + bias[l:l + 1, :]       # folded BN affine + b2
        acc = jnp.maximum(acc, o)                          # fused max over channels
    out_ref[...] = acc


# --------------------------------------------------------------------------- #
# Wrapper.                                                                     #
# --------------------------------------------------------------------------- #
def max_classifier(seq, w1, b1, gamma, beta, w2, b2, *,
                   matmul_dtype=jnp.bfloat16, tile_b=None):
    """seq: (B, L, D); w1: (D, H); b1: (H,)/(1,H); gamma/beta: (L,)-shaped;
    w2: (H, N); b2: (N,)/(1,N).  Returns (B, N) float32."""
    seq = seq.astype(jnp.float32)
    B, L, D = seq.shape
    H = w1.shape[1]
    N = w2.shape[1]
    w1 = w1.astype(jnp.float32)
    w2 = w2.astype(jnp.float32)
    b1 = b1.reshape(1, H).astype(jnp.float32)
    b2 = b2.reshape(1, N).astype(jnp.float32)
    gamma = gamma.reshape(L).astype(jnp.float32)
    beta = beta.reshape(L).astype(jnp.float32)

    if tile_b is None:
        tile_b = _pick_tile_b(B)
    tile_b = max(8, _round_up(min(tile_b, _round_up(B, 8)), 8))
    n_tiles = -(-B // tile_b)
    Bp = n_tiles * tile_b
    Np = _round_up(N, 128)                                 # lane-dense output columns

    seq_p = jnp.pad(seq, ((0, Bp - B), (0, 0), (0, 0))) if Bp != B else seq
    if Np != N:
        w2_p = jnp.pad(w2, ((0, 0), (0, Np - N)))
        b2_p = jnp.pad(b2, ((0, 0), (0, Np - N)))
    else:
        w2_p, b2_p = w2, b2

    n_valid = jnp.array([B], dtype=jnp.int32)              # scalar-prefetch (SMEM)

    fb = 4
    vmem1 = int(min(56 * 2**20, max(32 * 2**20,
                2 * tile_b * L * D * fb            # seq tile (double-buffered)
                + 3 * L * tile_b * H * fb          # h3 + centred temp
                + (D * H + H) * fb + (1 << 20))))
    vmem2 = int(min(56 * 2**20, max(32 * 2**20,
                2 * tile_b * L * D * fb
                + 8 * tile_b * max(H, Np) * fb
                + (D * H + H * Np + H + L * (Np + 1)) * fb
                + 2 * tile_b * Np * fb + (1 << 20))))

    # ---- pass 1: BatchNorm statistics (sequential accumulation over tiles) ----
    mean, var = pl.pallas_call(
        functools.partial(_stats_kernel, matmul_dtype=matmul_dtype),
        out_shape=(jax.ShapeDtypeStruct((L, 1), jnp.float32),
                   jax.ShapeDtypeStruct((L, 1), jnp.float32)),
        grid_spec=pltpu.PrefetchScalarGridSpec(
            num_scalar_prefetch=1,
            grid=(n_tiles,),
            in_specs=[
                pl.BlockSpec((tile_b, L, D), lambda t, nb: (t, 0, 0)),
                pl.BlockSpec((D, H), lambda t, nb: (0, 0)),
                pl.BlockSpec((1, H), lambda t, nb: (0, 0)),
            ],
            out_specs=[
                pl.BlockSpec((L, 1), lambda t, nb: (0, 0)),
                pl.BlockSpec((L, 1), lambda t, nb: (0, 0)),
            ],
            scratch_shapes=[pltpu.VMEM((L, 1), jnp.float32),
                            pltpu.VMEM((L, 1), jnp.float32)],
        ),
        compiler_params=pltpu.CompilerParams(
            dimension_semantics=("arbitrary",),
            vmem_limit_bytes=vmem1),
    )(n_valid, seq_p, w1, b1)

    # ---- fold BN affine (and its bias path through W2) on tiny (L,) vectors ----
    mean = mean.reshape(L)
    var = var.reshape(L)
    scale = gamma / jnp.sqrt(var + 1e-5)                              # (L,)
    shift = beta - mean * scale                                       # (L,)
    bias = shift[:, None] * jnp.sum(w2_p, axis=0)[None, :] + b2_p     # (L, Np)
    scale_2d = scale.reshape(L, 1)

    # ---- pass 2: normalize + Linear2 + max, fully fused per batch tile ----
    out_p = pl.pallas_call(
        functools.partial(_apply_kernel, matmul_dtype=matmul_dtype),
        out_shape=jax.ShapeDtypeStruct((Bp, Np), jnp.float32),
        grid_spec=pltpu.PrefetchScalarGridSpec(
            num_scalar_prefetch=0,
            grid=(n_tiles,),
            in_specs=[
                pl.BlockSpec((tile_b, L, D), lambda t: (t, 0, 0)),
                pl.BlockSpec((D, H), lambda t: (0, 0)),
                pl.BlockSpec((1, H), lambda t: (0, 0)),
                pl.BlockSpec((H, Np), lambda t: (0, 0)),
                pl.BlockSpec((L, 1), lambda t: (0, 0)),
                pl.BlockSpec((L, Np), lambda t: (0, 0)),
            ],
            out_specs=pl.BlockSpec((tile_b, Np), lambda t: (t, 0)),
        ),
        compiler_params=pltpu.CompilerParams(
            dimension_semantics=("parallel",),      # independent tiles -> megacore
            vmem_limit_bytes=vmem2),
    )(seq_p, w1, b1, w2_p, scale_2d, bias)

    return out_p[:B, :N]


def max_classifier_ref(seq, w1, b1, gamma, beta, w2, b2):
    """Pure-JAX f32 reference mirroring the PyTorch module (training-mode BN)."""
    h = jnp.einsum('bld,dh->blh', seq, w1) + b1.reshape(1, 1, -1)
    h = jnp.where(h >= 0, h, 128.0 * h)
    mean = jnp.mean(h, axis=(0, 2), keepdims=True)
    var = jnp.mean((h - mean) ** 2, axis=(0, 2), keepdims=True)
    y = (h - mean) / jnp.sqrt(var + 1e-5) * gamma.reshape(1, -1, 1) \
        + beta.reshape(1, -1, 1)
    o = jnp.einsum('blh,hn->bln', y, w2) + b2.reshape(1, 1, -1)
    return jnp.max(o, axis=1)


if __name__ == "__main__":
    B, L, D, H, NUM_LABELS = 2, 17, 32, 128, 8   # L = 17 forced by nn.BatchNorm1d(17)

    key = jax.random.PRNGKey(0)
    k_seq, k_w1, k_b1, k_w2, k_b2, k_g, k_bt = jax.random.split(key, 7)

    seq = jax.random.normal(k_seq, (B, L, D), dtype=jnp.float32)

    bound1 = 1.0 / float(D) ** 0.5
    w1 = jax.random.uniform(k_w1, (D, H), jnp.float32, -bound1, bound1)
    b1 = jax.random.uniform(k_b1, (1, H), jnp.float32, -bound1, bound1)
    # slightly randomized BN affine so the scale/shift folding is actually exercised
    gamma = 1.0 + 0.1 * jax.random.normal(k_g, (L,), jnp.float32)
    beta = 0.1 * jax.random.normal(k_bt, (L,), jnp.float32)
    bound2 = 1.0 / float(H) ** 0.5
    w2 = jax.random.uniform(k_w2, (H, NUM_LABELS), jnp.float32, -bound2, bound2)
    b2 = jax.random.uniform(k_b2, (1, NUM_LABELS), jnp.float32, -bound2, bound2)

    ref = max_classifier_ref(seq, w1, b1, gamma, beta, w2, b2)

    # Production configuration: bf16 MXU operands, f32 accumulation.  Compared to
    # the f32 reference with a loose tolerance (bf16 rounding through LeakyReLU(128)
    # amplified activations gives O(1e-2) absolute deviations on O(1) outputs).
    out_bf16 = jax.block_until_ready(
        max_classifier(seq, w1, b1, gamma, beta, w2, b2,
                       matmul_dtype=jnp.bfloat16))
    assert out_bf16.shape == (B, NUM_LABELS)
    assert jnp.allclose(out_bf16, ref, atol=1e-1, rtol=1e-1), \
        "bf16-matmul kernel diverged from reference beyond bf16 rounding noise"

    # Strict semantics check: f32 MXU operands must match the f32 reference tightly.
    out_f32 = jax.block_until_ready(
        max_classifier(seq, w1, b1, gamma, beta, w2, b2,
                       matmul_dtype=jnp.float32))
    assert out_f32.shape == (B, NUM_LABELS)
    assert jnp.allclose(out_f32, ref, atol=2e-4, rtol=2e-4), \
        "f32 kernel mismatch vs JAX reference"

    print("KERNEL_OK")
</pallas_src>

<mosaic_0001>
module attributes {stable_mosaic.version = 11 : i64} {
  func.func @_stats_kernel(%arg0: i32, %arg1: memref<1xi32, #tpu.memory_space<smem>>, %arg2: memref<8x17x32xf32, #tpu.memory_space<vmem>>, %arg3: memref<32x128xf32, #tpu.memory_space<vmem>>, %arg4: memref<1x128xf32, #tpu.memory_space<vmem>>, %arg5: memref<17x1xf32, #tpu.memory_space<vmem>>, %arg6: memref<17x1xf32, #tpu.memory_space<vmem>>, %arg7: memref<17x1xf32, #tpu.memory_space<vmem>>, %arg8: memref<17x1xf32, #tpu.memory_space<vmem>>) attributes {dimension_semantics = [#tpu.dimension_semantics<arbitrary>], iteration_bounds = array<i64: 1>, scalar_prefetch = 1 : i64, scratch_operands = 2 : i64, tpu.core_type = #tpu.core_type<tc>, window_params = [{transform_indices = @transform_0, window_bounds = array<i64: 8, 17, 32>}, {pipeline_mode = #tpu.pipeline_mode<synchronous>, transform_indices = @transform_1, window_bounds = array<i64: 32, 128>}, {pipeline_mode = #tpu.pipeline_mode<synchronous>, transform_indices = @transform_2, window_bounds = array<i64: 1, 128>}, {pipeline_mode = #tpu.pipeline_mode<synchronous>, transform_indices = @transform_3, window_bounds = array<i64: 17, 1>}, {pipeline_mode = #tpu.pipeline_mode<synchronous>, transform_indices = @transform_4, window_bounds = array<i64: 17, 1>}]} {
    %c0 = arith.constant 0 : index
    %0 = memref.load %arg1[%c0] : memref<1xi32, #tpu.memory_space<smem>>
    %c0_0 = arith.constant 0 : index
    %c0_1 = arith.constant 0 : index
    %c0_2 = arith.constant 0 : index
    %1 = vector.load %arg2[%c0_0, %c0_1, %c0_2] : memref<8x17x32xf32, #tpu.memory_space<vmem>>, vector<8x17x32xf32>
    %2 = tpu.transpose %1, [1, 0, 2] : vector<8x17x32xf32> -> vector<17x8x32xf32>
    %3 = vector.shape_cast %2 : vector<17x8x32xf32> to vector<136x32xf32>
    %4 = arith.truncf %3 : vector<136x32xf32> to vector<136x32xbf16>
    %c0_3 = arith.constant 0 : index
    %c0_4 = arith.constant 0 : index
    %5 = vector.load %arg3[%c0_3, %c0_4] : memref<32x128xf32, #tpu.memory_space<vmem>>, vector<32x128xf32>
    %6 = arith.truncf %5 : vector<32x128xf32> to vector<32x128xbf16>
    %cst = arith.constant dense<0.000000e+00> : vector<136x128xf32>
    %7 = tpu.matmul %4, %6, %cst {dimension_numbers = #tpu.dot_dimension_numbers<[1], [0], [0], [1], [0, 0, 1, 1], [], []>} : vector<136x32xbf16>, vector<32x128xbf16>, vector<136x128xf32> -> vector<136x128xf32>
    %c0_5 = arith.constant 0 : index
    %c0_6 = arith.constant 0 : index
    %8 = vector.load %arg4[%c0_5, %c0_6] : memref<1x128xf32, #tpu.memory_space<vmem>>, vector<1x128xf32>
    %9 = vector.broadcast %8 : vector<1x128xf32> to vector<136x128xf32>
    %10 = arith.addf %7, %9 : vector<136x128xf32>
    %cst_7 = arith.constant 0.000000e+00 : f32
    %11 = vector.broadcast %cst_7 : f32 to vector<136x128xf32>
    %12 = arith.cmpf oge, %10, %11 : vector<136x128xf32>
    %cst_8 = arith.constant 1.280000e+02 : f32
    %13 = vector.broadcast %cst_8 : f32 to vector<136x128xf32>
    %14 = arith.mulf %13, %10 : vector<136x128xf32>
    %15 = arith.select %12, %10, %14 : vector<136x128xi1>, vector<136x128xf32>
    %16 = vector.shape_cast %15 : vector<136x128xf32> to vector<17x8x128xf32>
    %c8_i32 = arith.constant 8 : i32
    %17 = arith.muli %arg0, %c8_i32 : i32
    %18 = arith.subi %0, %17 : i32
    %c8_i32_9 = arith.constant 8 : i32
    %19 = arith.minsi %18, %c8_i32_9 : i32
    %20 = tpu.iota {dimensions = array<i32: 1>} : vector<1x8x1xi32>
    %21 = vector.broadcast %19 : i32 to vector<1x8x1xi32>
    %22 = arith.cmpi slt, %20, %21 : vector<1x8x1xi32>
    %23 = arith.extui %22 : vector<1x8x1xi1> to vector<1x8x1xi32>
    %24 = arith.sitofp %23 : vector<1x8x1xi32> to vector<1x8x1xf32>
    %c128_i32 = arith.constant 128 : i32
    %25 = arith.muli %19, %c128_i32 : i32
    %26 = arith.sitofp %25 : i32 to f32
    %c8_i32_10 = arith.constant 8 : i32
    %27 = arith.muli %arg0, %c8_i32_10 : i32
    %28 = arith.minsi %0, %27 : i32
    %c128_i32_11 = arith.constant 128 : i32
    %29 = arith.muli %28, %c128_i32_11 : i32
    %30 = arith.sitofp %29 : i32 to f32
    %cst_12 = arith.constant dense<0.000000e+00> : vector<17x8xf32>
    %31 = vector.multi_reduction <add>, %16, %cst_12 [2] : vector<17x8x128xf32> to vector<17x8xf32>
    %32 = vector.shape_cast %31 : vector<17x8xf32> to vector<17x8x1xf32>
    %33 = vector.broadcast %24 : vector<1x8x1xf32> to vector<17x8x1xf32>
    %34 = arith.mulf %32, %33 : vector<17x8x1xf32>
    %cst_13 = arith.constant dense<0.000000e+00> : vector<17x1xf32>
    %35 = vector.multi_reduction <add>, %34, %cst_13 [1] : vector<17x8x1xf32> to vector<17x1xf32>
    %36 = vector.shape_cast %35 : vector<17x1xf32> to vector<17x1x1xf32>
    %37 = vector.broadcast %26 : f32 to vector<17x1x1xf32>
    %38 = arith.divf %36, %37 : vector<17x1x1xf32>
    %39 = vector.broadcast %38 : vector<17x1x1xf32> to vector<17x8x128xf32>
    %40 = arith.subf %16, %39 : vector<17x8x128xf32>
    %41 = arith.mulf %40, %40 : vector<17x8x128xf32>
    %cst_14 = arith.constant dense<0.000000e+00> : vector<17x8xf32>
    %42 = vector.multi_reduction <add>, %41, %cst_14 [2] : vector<17x8x128xf32> to vector<17x8xf32>
    %43 = vector.shape_cast %42 : vector<17x8xf32> to vector<17x8x1xf32>
    %44 = vector.broadcast %24 : vector<1x8x1xf32> to vector<17x8x1xf32>
    %45 = arith.mulf %43, %44 : vector<17x8x1xf32>
    %cst_15 = arith.constant dense<0.000000e+00> : vector<17x1xf32>
    %46 = vector.multi_reduction <add>, %45, %cst_15 [1] : vector<17x8x1xf32> to vector<17x1xf32>
    %47 = vector.shape_cast %46 : vector<17x1xf32> to vector<17x1x1xf32>
    %48 = vector.shape_cast %38 : vector<17x1x1xf32> to vector<17x1xf32>
    %49 = vector.shape_cast %47 : vector<17x1x1xf32> to vector<17x1xf32>
    %c0_i32 = arith.constant 0 : i32
    %50 = arith.cmpi eq, %arg0, %c0_i32 : i32
    %51 = arith.extui %50 : i1 to i32
    %c0_i32_16 = arith.constant 0 : i32
    %52 = arith.cmpi ne, %51, %c0_i32_16 : i32
    scf.if %52 {
      %c0_21 = arith.constant 0 : index
      %c0_22 = arith.constant 0 : index
      %59 = vector.load %arg7[%c0_21, %c0_22] : memref<17x1xf32, #tpu.memory_space<vmem>>, vector<17x1xf32>
      tpu.vector_store %arg7[%c0_21, %c0_22], %48 {strides = array<i32>} : memref<17x1xf32, #tpu.memory_space<vmem>>, vector<17x1xf32>,
      %c0_23 = arith.constant 0 : index
      %c0_24 = arith.constant 0 : index
      %60 = vector.load %arg8[%c0_23, %c0_24] : memref<17x1xf32, #tpu.memory_space<vmem>>, vector<17x1xf32>
      tpu.vector_store %arg8[%c0_23, %c0_24], %49 {strides = array<i32>} : memref<17x1xf32, #tpu.memory_space<vmem>>, vector<17x1xf32>,
    } else {
    }
    %c0_i32_17 = arith.constant 0 : i32
    %53 = arith.cmpi sgt, %arg0, %c0_i32_17 : i32
    %54 = arith.extui %53 : i1 to i32
    %c0_i32_18 = arith.constant 0 : i32
    %55 = arith.cmpi ne, %54, %c0_i32_18 : i32
    scf.if %55 {
      %59 = arith.addf %30, %26 : f32
      %c0_21 = arith.constant 0 : index
      %c0_22 = arith.constant 0 : index
      %60 = vector.load %arg7[%c0_21, %c0_22] : memref<17x1xf32, #tpu.memory_space<vmem>>, vector<17x1xf32>
      %61 = arith.subf %48, %60 : vector<17x1xf32>
      %c0_23 = arith.constant 0 : index
      %c0_24 = arith.constant 0 : index
      %62 = vector.load %arg7[%c0_23, %c0_24] : memref<17x1xf32, #tpu.memory_space<vmem>>, vector<17x1xf32>
      %63 = arith.divf %26, %59 : f32
      %64 = vector.broadcast %63 : f32 to vector<17x1xf32>
      %65 = arith.mulf %61, %64 : vector<17x1xf32>
      %66 = arith.addf %62, %65 : vector<17x1xf32>
      %c0_25 = arith.constant 0 : index
      %c0_26 = arith.constant 0 : index
      %67 = vector.load %arg7[%c0_25, %c0_26] : memref<17x1xf32, #tpu.memory_space<vmem>>, vector<17x1xf32>
      tpu.vector_store %arg7[%c0_25, %c0_26], %66 {strides = array<i32>} : memref<17x1xf32, #tpu.memory_space<vmem>>, vector<17x1xf32>,
      %c0_27 = arith.constant 0 : index
      %c0_28 = arith.constant 0 : index
      %68 = vector.load %arg8[%c0_27, %c0_28] : memref<17x1xf32, #tpu.memory_space<vmem>>, vector<17x1xf32>
      %69 = arith.addf %68, %49 : vector<17x1xf32>
      %70 = arith.mulf %61, %61 : vector<17x1xf32>
      %71 = arith.mulf %30, %26 : f32
      %72 = arith.divf %71, %59 : f32
      %73 = vector.broadcast %72 : f32 to vector<17x1xf32>
      %74 = arith.mulf %70, %73 : vector<17x1xf32>
      %75 = arith.addf %69, %74 : vector<17x1xf32>
      %c0_29 = arith.constant 0 : index
      %c0_30 = arith.constant 0 : index
      %76 = vector.load %arg8[%c0_29, %c0_30] : memref<17x1xf32, #tpu.memory_space<vmem>>, vector<17x1xf32>
      tpu.vector_store %arg8[%c0_29, %c0_30], %75 {strides = array<i32>} : memref<17x1xf32, #tpu.memory_space<vmem>>, vector<17x1xf32>,
    } else {
    }
    %c0_i32_19 = arith.constant 0 : i32
    %56 = arith.cmpi eq, %arg0, %c0_i32_19 : i32
    %57 = arith.extui %56 : i1 to i32
    %c0_i32_20 = arith.constant 0 : i32
    %58 = arith.cmpi ne, %57, %c0_i32_20 : i32
    scf.if %58 {
      %59 = arith.sitofp %0 : i32 to f32
      %cst_21 = arith.constant 1.280000e+02 : f32
      %60 = arith.mulf %59, %cst_21 : f32
      %c0_22 = arith.constant 0 : index
      %c0_23 = arith.constant 0 : index
      %61 = vector.load %arg7[%c0_22, %c0_23] : memref<17x1xf32, #tpu.memory_space<vmem>>, vector<17x1xf32>
      %c0_24 = arith.constant 0 : index
      %c0_25 = arith.constant 0 : index
      %62 = vector.load %arg5[%c0_24, %c0_25] : memref<17x1xf32, #tpu.memory_space<vmem>>, vector<17x1xf32>
      tpu.vector_store %arg5[%c0_24, %c0_25], %61 {strides = array<i32>} : memref<17x1xf32, #tpu.memory_space<vmem>>, vector<17x1xf32>,
      %c0_26 = arith.constant 0 : index
      %c0_27 = arith.constant 0 : index
      %63 = vector.load %arg8[%c0_26, %c0_27] : memref<17x1xf32, #tpu.memory_space<vmem>>, vector<17x1xf32>
      %64 = vector.broadcast %60 : f32 to vector<17x1xf32>
      %65 = arith.divf %63, %64 : vector<17x1xf32>
      %c0_28 = arith.constant 0 : index
      %c0_29 = arith.constant 0 : index
      %66 = vector.load %arg6[%c0_28, %c0_29] : memref<17x1xf32, #tpu.memory_space<vmem>>, vector<17x1xf32>
      tpu.vector_store %arg6[%c0_28, %c0_29], %65 {strides = array<i32>} : memref<17x1xf32, #tpu.memory_space<vmem>>, vector<17x1xf32>,
    } else {
    }
    return
  }
  func.func @transform_0(%arg0: i32, %arg1: memref<1xi32, #tpu.memory_space<smem>>) -> (i32, i32, i32) {
    %c0_i32 = arith.constant 0 : i32
    %c0_i32_0 = arith.constant 0 : i32
    %c0_i32_1 = arith.constant 0 : i32
    return %arg0, %c0_i32, %c0_i32_0 : i32, i32, i32
  }
  func.func @transform_1(%arg0: i32, %arg1: memref<1xi32, #tpu.memory_space<smem>>) -> (i32, i32) {
    %c0_i32 = arith.constant 0 : i32
    %c0_i32_0 = arith.constant 0 : i32
    %c0_i32_1 = arith.constant 0 : i32
    return %c0_i32, %c0_i32_0 : i32, i32
  }
  func.func @transform_2(%arg0: i32, %arg1: memref<1xi32, #tpu.memory_space<smem>>) -> (i32, i32) {
    %c0_i32 = arith.constant 0 : i32
    %c0_i32_0 = arith.constant 0 : i32
    %c0_i32_1 = arith.constant 0 : i32
    return %c0_i32, %c0_i32_0 : i32, i32
  }
  func.func @transform_3(%arg0: i32, %arg1: memref<1xi32, #tpu.memory_space<smem>>) -> (i32, i32) {
    %c0_i32 = arith.constant 0 : i32
    %c0_i32_0 = arith.constant 0 : i32
    %c0_i32_1 = arith.constant 0 : i32
    return %c0_i32, %c0_i32_0 : i32, i32
  }
  func.func @transform_4(%arg0: i32, %arg1: memref<1xi32, #tpu.memory_space<smem>>) -> (i32, i32) {
    %c0_i32 = arith.constant 0 : i32
    %c0_i32_0 = arith.constant 0 : i32
    %c0_i32_1 = arith.constant 0 : i32
    return %c0_i32, %c0_i32_0 : i32, i32
  }
}

</mosaic_0001>

<bundles_post_ra>
// kernel: tpu_custom_call.1
= control target key start
LH: loop header
LB: loop body
LE: loop exit
PB: predicated region body
PF: predicated region fallthrough
CT: control target
= control target key end

     0   :  { %v1308_v3 = vmov 1983009808   ;;  %v1309_v5 = vmov 1934713408   ;;  %vm45_vm0 = vcmask 1047556   ;;  %vm326_vm1 = vcmask 261120   ;;  %s1853_s2 = inlined_call_operand.vmem [shape: f32[32,128], index: 2, kind: input, shape index: {}]   ;;  %s1854_s1 = inlined_call_operand.vmem [shape: f32[8,17,32], index: 1, kind: input, shape index: {}]   ;;  %s1855_s3 = inlined_call_operand.vmem [shape: f32[1,128], index: 3, kind: input, shape index: {}]   ;;  %s1856_s0 = inlined_call_operand.<no memory space> [shape: s32[1], index: 0, kind: input, shape index: {}]   ;;  %s1857_s4 = inlined_call_operand.vmem [shape: f32[17,1], index: 4, kind: output, shape index: {0}]   ;;  %s1858_s5 = inlined_call_operand.vmem [shape: f32[17,1], index: 5, kind: output, shape index: {1}]  }
   0x1   :  { %v318_v0 = vld [vmem:[%s1853_s2 + $0x10] sm:$0xff]  ;;  %v319_v1 = vld [vmem:[%s1853_s2 + $0x18] sm:$0xff]  ;;  %v316_v2 = vld [vmem:[%s1853_s2] sm:$0xff]  ;;  %v50_v4 = vunpack.c.l.s4 %v1308_v3  ;;  %v98_v6 = vunpack.c.l.s4 %v1309_v5  ;;  %p460_p0 = scmp.lt.s32.totalorder %s1856_s0, 8  ;;  %s1240_s11 = scvt.s32.f32 %s1856_s0 }
   0x2   :  { %v321_v7 = vpack.c.bf16 %v319_v1, %v318_v0  ;;  %v317_v8 = vld [vmem:[%s1853_s2 + $0x8] sm:$0xff]  ;;  %v20_v9 = vld [vmem:[%s1854_s1] sm:$0xff]  ;;  %v23_v10 = vld [vmem:[%s1854_s1 + $0x18] sm:$0xff] }
   0x3   :  { %v320_v11 = vpack.c.bf16 %v317_v8, %v316_v2  ;;  %v26_v12 = vld [vmem:[%s1854_s1 + $0x30] sm:$0xff]  ;;  %v29_v13 = vld [vmem:[%s1854_s1 + $0x48] sm:$0xff]  ;;  %v32_v14 = vld [vmem:[%s1854_s1 + $0x60] sm:$0xff]  ;;  %v47_v15 = vrot.slane %v20_v9, 4  ;;  %v1368_v16 = vunpack.c.0.s8 %v50_v4  ;;  %v59_v17 = vrot.slane %v23_v10, 4  ;;  %s461_s26 = scalar_select %p460_p0, %s1856_s0, 8 }
   0x4   :  { %360 = vmatpush.bf16.msra.mxu0 %v321_v7  ;;  %1294 = vmatpush.bf16.msra.mxu1 %v321_v7  ;;  %v35_v18 = vld [vmem:[%s1854_s1 + $0x78] sm:$0xff]  ;;  %v38_v19 = vld [vmem:[%s1854_s1 + $0x90] sm:$0xff]  ;;  %v41_v20 = vld [vmem:[%s1854_s1 + $0xa8] sm:$0xff]  ;;  %v44_v21 = vrot.slane %v26_v12, 4  ;;  %v57_v22 = vrot.slane %v29_v13, 4  ;;  %v71_v23 = vrot.slane %v32_v14, 4  ;;  %v1379_v24 = vunpack.c.0.s8 %v98_v6 }
   0x5   :  { %1295 = vmatpush.bf16.msra.mxu2 %v321_v7  ;;  %1296 = vmatpush.bf16.msra.mxu3 %v321_v7  ;;  %v69_v25 = vrot.slane %v38_v19, 4  ;;  %v81_v26 = vrot.slane %v41_v20, 4  ;;  %v83_v27 = vrot.slane %v35_v18, 4  ;;  %v48_v28 = vsel %vm45_vm0, %v26_v12, %v47_v15  ;;  %v1385_v29 = vld [vmem:[%s1854_s1 + $0x38] sm:$0xff]  ;;  %v1396_v34 = vld [vmem:[%s1854_s1 + $0x50] sm:$0xff]  ;;  %v21_v42 = vld [vmem:[%s1854_s1 + $0x8] sm:$0xff] }
   0x6   :  { %v46_v30 = vsel %vm45_vm0, %v44_v21, %v20_v9  ;;  %v58_v31 = vsel %vm45_vm0, %v57_v22, %v23_v10  ;;  %v1390_v32 = vperm.slane %v48_v28, %v1368_v16  ;;  %v60_v33 = vsel %vm45_vm0, %v29_v13, %v59_v17  ;;  %v24_v43 = vld [vmem:[%s1854_s1 + $0x20] sm:$0xff]  ;;  %v39_v54 = vld [vmem:[%s1854_s1 + $0x98] sm:$0xff]  ;;  %v42_v55 = vld [vmem:[%s1854_s1 + $0xb0] sm:$0xff]  ;;  %s1292_s27 = sshll.u32 %s461_s26, 7 }
   0x7   :  { %v1399_v35 = vperm.slane %v46_v30, %v1368_v16  ;;  %v1402_v36 = vperm.slane %v58_v31, %v1368_v16  ;;  %v70_v37 = vsel %vm45_vm0, %v69_v25, %v32_v14  ;;  %v82_v38 = vsel %vm45_vm0, %v81_v26, %v35_v18  ;;  %v36_v63 = vld [vmem:[%s1854_s1 + $0x80] sm:$0xff]  ;;  %v33_v2 = vld [vmem:[%s1854_s1 + $0x68] sm:$0xff]  ;;  %s469_s28 = scvt.s32.f32 %s1292_s27 }
   0x8   :  { %361 = vmatpush.bf16.msra.mxu0 %v320_v11  ;;  %1297 = vmatpush.bf16.msra.mxu1 %v320_v11  ;;  %v1407_v39 = vperm.slane %v70_v37, %v1368_v16  ;;  %v1410_v40 = vperm.slane %v82_v38, %v1368_v16  ;;  %v1413_v41 = vperm.slane %v60_v33, %v1368_v16  ;;  %v157_v44 = vrot.slane %v1385_v29, 4 }
   0x9   :  { %1298 = vmatpush.bf16.msra.mxu2 %v320_v11  ;;  %1299 = vmatpush.bf16.msra.mxu3 %v320_v11  ;;  %v93_v45 = vrot.slane %v1402_v36, 4  ;;  %v72_v46 = vsel %vm45_vm0, %v38_v19, %v71_v23  ;;  %v84_v47 = vsel %vm45_vm0, %v41_v20, %v83_v27  ;;  %v169_v48 = vrot.slane %v1396_v34, 4 }
   0xa   :  { %v117_v49 = vrot.slane %v1410_v40, 4  ;;  %v1428_v50 = vperm.slane %v72_v46, %v1368_v16  ;;  %v1431_v51 = vperm.slane %v84_v47, %v1368_v16  ;;  %v105_v52 = vrot.slane %v1413_v41, 4 }
   0xb   :  { %v94_v53 = vsel %vm45_vm0, %v93_v45, %v1399_v35  ;;  %v158_v56 = vsel %vm45_vm0, %v157_v44, %v21_v42  ;;  %v170_v57 = vsel %vm45_vm0, %v169_v48, %v24_v43  ;;  %v171_v58 = vrot.slane %v24_v43, 4 }
   0xc   :  { %v100_v59 = vperm.slane %v94_v53, %v1379_v24  ;;  %v118_v60 = vsel %vm45_vm0, %v117_v49, %v1407_v39  ;;  %v106_v61 = vsel %vm45_vm0, %v105_v52, %v1390_v32  ;;  %v129_v62 = vrot.slane %v1431_v51, 4 }
   0xd   :  { %v124_v0 = vperm.slane %v118_v60, %v1379_v24  ;;  %v112_v1 = vperm.slane %v106_v61, %v1379_v24  ;;  %v1459_v3 = vperm.slane %v158_v56, %v1368_v16  ;;  %v1462_v4 = vperm.slane %v170_v57, %v1368_v16 }
   0xe   :  { %v143_v5 = vrot.slane %v100_v59, 4  ;;  %v130_v6 = vsel %vm45_vm0, %v129_v62, %v1428_v50  ;;  %v181_v7 = vrot.slane %v39_v54, 4  ;;  %v193_v8 = vrot.slane %v42_v55, 4 }
   0xf   :  { %v141_v9 = vrot.slane %v124_v0, 4  ;;  %v136_v10 = vperm.slane %v130_v6, %v1379_v24  ;;  %v151_v11 = vrot.slane %v112_v1, 4  ;;  %v195_v12 = vrot.slane %v36_v63, 4 }
  0x10   :  { %v144_v13 = vsel %vm45_vm0, %v124_v0, %v143_v5  ;;  %v182_v14 = vsel %vm45_vm0, %v181_v7, %v33_v2  ;;  %v194_v15 = vsel %vm45_vm0, %v193_v8, %v36_v63  ;;  %v207_v17 = vrot.slane %v1459_v3, 4 }
  0x11   :  { %v142_v18 = vsel %vm45_vm0, %v141_v9, %v100_v59  ;;  %v149_v19 = vrot.slane %v136_v10, 4  ;;  %v152_v20 = vsel %vm45_vm0, %v136_v10, %v151_v11  ;;  %v1474_v21 = vperm.slane %v182_v14, %v1368_v16 }
  0x12   :  { %v307_v22 = vpack.c.bf16 %v144_v13, %v142_v18  ;;  %v1477_v23 = vperm.slane %v194_v15, %v1368_v16  ;;  %v208_v25 = vsel %vm45_vm0, %v1462_v4, %v207_v17  ;;  %v159_v26 = vrot.slane %v21_v42, 4 }
  0x13   :  { %v150_v27 = vsel %vm45_vm0, %v149_v19, %v112_v1  ;;  %v216_v28 = vperm.slane %v208_v25, %v1379_v24  ;;  %v231_v30 = vrot.slane %v1474_v21, 4  ;;  %v172_v31 = vsel %vm45_vm0, %v1396_v34, %v171_v58  ;;  %v31_v25 = vld [vmem:[%s1854_s1 + $0x58] sm:$0x1] }
  0x14   :  { %1282 = vmatmul.msk.bf16.vlgmr.msra.gmra.mxu0 %vm326_vm1, %v307_v22  ;;  %v309_v33 = vpack.c.bf16 %v152_v20, %v150_v27  ;;  %v160_v37 = vsel %vm45_vm0, %v1385_v29, %v159_v26  ;;  %v180_v38 = vperm.slane %v172_v31, %v1368_v16  ;;  %v183_v43 = vrot.slane %v33_v2, 4 }
  0x15   :  { %v232_v42 = vsel %vm45_vm0, %v1477_v23, %v231_v30  ;;  %v259_v44 = vrot.slane %v216_v28, 4  ;;  %v168_v45 = vperm.slane %v160_v37, %v1368_v16  ;;  %v196_v46 = vsel %vm45_vm0, %v42_v55, %v195_v12  ;;  %v25_v37 = vld [vmem:[%s1854_s1 + $0x28] sm:$0x1] }
  0x16   :  { %1284 = vmatmul.msk.bf16.vlgmr.msra.gmra.mxu1 %vm326_vm1, %v309_v33  ;;  %v240_v34 = vperm.slane %v232_v42, %v1379_v24  ;;  %v184_v47 = vsel %vm45_vm0, %v39_v54, %v183_v43  ;;  %v204_v48 = vperm.slane %v196_v46, %v1368_v16  ;;  %v217_v29 = vrot.slane %v180_v38, 4 }
  0x17   :  { %v192_v49 = vperm.slane %v184_v47, %v1368_v16  ;;  %v107_v52 = vrot.slane %v1390_v32, 4  ;;  %v131_v53 = vrot.slane %v1428_v50, 4  ;;  %v219_v61 = vrot.slane %v168_v45, 4 }
  0x18   :  { %v257_v56 = vrot.slane %v240_v34, 4  ;;  %v260_v57 = vsel %vm45_vm0, %v240_v34, %v259_v44  ;;  %v218_v55 = vsel %vm45_vm0, %v217_v29, %v168_v45  ;;  %v241_v58 = vrot.slane %v204_v48, 4 }
  0x19   :  { %v224_v59 = vperm.slane %v218_v55, %v1379_v24  ;;  %v108_v54 = vsel %vm45_vm0, %v1413_v41, %v107_v52  ;;  %v132_v60 = vsel %vm45_vm0, %v1431_v51, %v131_v53  ;;  %v243_v7 = vrot.slane %v192_v49, 4 }
  0x1a   :  { %v258_v62 = vsel %vm45_vm0, %v257_v56, %v216_v28  ;;  %v242_v32 = vsel %vm45_vm0, %v241_v58, %v192_v49  ;;  %v116_v50 = vperm.slane %v108_v54, %v1379_v24  ;;  %v140_v63 = vperm.slane %v132_v60, %v1379_v24 }
  0x1b   :  { %v312_v0 = vpack.c.bf16 %v260_v57, %v258_v62  ;;  %v248_v1 = vperm.slane %v242_v32, %v1379_v24  ;;  %v263_v2 = vrot.slane %v224_v59, 4  ;;  %v95_v41 = vrot.slane %v1399_v35, 4  ;;  %v22_v57 = vld [vmem:[%s1854_s1 + $0x10] sm:$0x1] }
  0x1c   :  { %v153_v5 = vrot.slane %v140_v63, 4  ;;  %v155_v6 = vrot.slane %v116_v50, 4  ;;  %v119_v9 = vrot.slane %v1407_v39, 4  ;;  %v220_v11 = vsel %vm45_vm0, %v180_v38, %v219_v61  ;;  %v37_v38 = vld [vmem:[%s1854_s1 + $0x88] sm:$0x1] }
  0x1d   :  { %1287 = vmatmul.msk.bf16.vlgmr.msra.gmra.mxu2 %vm326_vm1, %v312_v0  ;;  %v261_v51 = vrot.slane %v248_v1, 4  ;;  %v264_v8 = vsel %vm45_vm0, %v248_v1, %v263_v2  ;;  %v96_v12 = vsel %vm45_vm0, %v1402_v36, %v95_v41  ;;  %v244_v35 = vsel %vm45_vm0, %v204_v48, %v243_v7 }
  0x1e   :  { %v154_v10 = vsel %vm45_vm0, %v153_v5, %v116_v50  ;;  %v156_v14 = vsel %vm45_vm0, %v140_v63, %v155_v6  ;;  %v104_v15 = vperm.slane %v96_v12, %v1379_v24  ;;  %v120_v18 = vsel %vm45_vm0, %v1410_v40, %v119_v9 }
  0x1f   :  { %v262_v13 = vsel %vm45_vm0, %v261_v51, %v224_v59  ;;  %v205_v39 = vrot.slane %v1462_v4, 4  ;;  %v229_v19 = vrot.slane %v1477_v23, 4  ;;  %v128_v20 = vperm.slane %v120_v18, %v1379_v24  ;;  %v40_v4 = vld [vmem:[%s1854_s1 + $0xa0] sm:$0x1]  ;;  %v43_v23 = vld [vmem:[%s1854_s1 + $0xb8] sm:$0x1] }
  0x20   :  { %v313_v17 = vpack.c.bf16 %v264_v8, %v262_v13  ;;  %v147_v22 = vrot.slane %v104_v15, 4  ;;  %v310_v36 = vpack.c.bf16 %v156_v14, %v154_v10  ;;  %v228_v26 = vperm.slane %v220_v11, %v1379_v24 }
  0x21   :  { %v252_v27 = vperm.slane %v244_v35, %v1379_v24  ;;  %v145_v28 = vrot.slane %v128_v20, 4  ;;  %v206_v30 = vsel %vm45_vm0, %v205_v39, %v1459_v3  ;;  %v230_v31 = vsel %vm45_vm0, %v229_v19, %v1474_v21  ;;  %v28_v3 = vld [vmem:[%s1854_s1 + $0x40] sm:$0x1]  ;;  %v34_v21 = vld [vmem:[%s1854_s1 + $0x70] sm:$0x1] }
  0x22   :  { %1288 = vmatmul.msk.bf16.vlgmr.msra.gmra.mxu3 %vm326_vm1, %v313_v17  ;;  %v148_v40 = vsel %vm45_vm0, %v128_v20, %v147_v22  ;;  %v275_v43 = vrot.slane %v31_v25, 4  ;;  %v281_v44 = vrot.slane %v40_v4, 4  ;;  %v287_v45 = vrot.slane %v43_v23, 4 }
  0x23   :  { %v146_v33 = vsel %vm45_vm0, %v145_v28, %v104_v15  ;;  %v265_v46 = vrot.slane %v252_v27, 4  ;;  %v267_v34 = vrot.slane %v228_v26, 4  ;;  %v212_v47 = vperm.slane %v206_v30, %v1379_v24 }
  0x24   :  { %v308_v42 = vpack.c.bf16 %v148_v40, %v146_v33  ;;  %v236_v48 = vperm.slane %v230_v31, %v1379_v24  ;;  %v288_v29 = vsel %vm45_vm0, %v287_v45, %v37_v38  ;;  %v269_v49 = vrot.slane %v28_v3, 4 }
  0x25   :  { %v276_v52 = vsel %vm45_vm0, %v275_v43, %v25_v37  ;;  %v282_v53 = vsel %vm45_vm0, %v281_v44, %v34_v21  ;;  %v292_v56 = vperm.slane %v288_v29, %v1368_v16  ;;  %v266_v55 = vsel %vm45_vm0, %v265_v46, %v228_v26 }
  0x26   :  { %1285 = vmatmul.msk.bf16.gmra.mxu1 %vm326_vm1, %v310_v36  ;;  %1283 = vmatmul.msk.bf16.gmra.mxu0 %vm326_vm1, %v308_v42  ;;  %v268_v58 = vsel %vm45_vm0, %v252_v27, %v267_v34  ;;  %v253_v59 = vrot.slane %v236_v48, 4  ;;  %v255_v54 = vrot.slane %v212_v47, 4  ;;  %v280_v60 = vperm.slane %v276_v52, %v1368_v16 }
  0x27   :  { %v286_v61 = vperm.slane %v282_v53, %v1368_v16  ;;  %v299_v62 = vrot.slane %v292_v56, 4  ;;  %v270_v32 = vsel %vm45_vm0, %v269_v49, %v22_v57  ;;  %v314_v50 = vpack.c.bf16 %v268_v58, %v266_v55 }
  0x28   :  { %v254_v63 = vsel %vm45_vm0, %v253_v59, %v212_v47  ;;  %v256_v0 = vsel %vm45_vm0, %v236_v48, %v255_v54  ;;  %v274_v1 = vperm.slane %v270_v32, %v1368_v16  ;;  %v293_v2 = vrot.slane %v280_v60, 4  ;;  %v1590_v16 = vld [vmem:[%s1855_s3] ss:$0 sm:$0xff] }
  0x29   :  { %v300_v5 = vsel %vm45_vm0, %v299_v62, %v286_v61  ;;  %v311_v6 = vpack.c.bf16 %v256_v0, %v254_v63 }
  0x2a   :  { %v304_v7 = vperm.slane %v300_v5, %v1379_v24  ;;  %v294_v41 = vsel %vm45_vm0, %v293_v2, %v274_v1 }
  0x2b   :  { %v298_v51 = vperm.slane %v294_v41, %v1379_v24 }
  0x2c   :  { %v305_v8 = vrot.slane %v304_v7, 4 }
  0x2e   :  { %v306_v9 = vsel %vm45_vm0, %v305_v8, %v298_v51 }
  0x2f   :  { %v315_v10 = vpack.c.bf16 %v306_v9, %v306_v9 }
  0x32   :  { %1289 = vmatmul.msk.bf16.gmra.mxu3 %vm326_vm1, %v314_v50 }
  0x36   :  { %1286 = vmatmul.msk.bf16.gmra.mxu1 %vm326_vm1, %v311_v6 }
  0x42   :  { %1290 = vmatmul.msk.bf16.gmra.mxu3 %vm326_vm1, %v315_v10 }
  0x91   :  { %v363_v11 = vpop.f32.mrf.mxu0 }
  0x92   :  { %v364_v12 = vadd.f32 %v1590_v16, %v363_v11 }
  0x93   :  { %v373_v13 = vpop.f32.mrf.mxu1 }
  0x94   :  { %v374_v14 = vadd.f32 %v1590_v16, %v373_v13  ;;  %vm407_vm2 = vcmp.ge.f32.partialorder %v364_v12, 0.0  ;;  %v424_v35 = vmul.f32 128.0, %v364_v12 }
  0x96   :  { %vm411_vm3 = vcmp.ge.f32.partialorder %v374_v14, 0.0  ;;  %v428_v24 = vmul.f32 128.0, %v374_v14  ;;  %v1594_v15 = vsel %vm407_vm2, %v364_v12, %v424_v35 }
  0x97   :  { %474 = vadd.xlane.f32.xlu0 %v1594_v15 }
  0x98   :  { %v1597_v17 = vsel %vm411_vm3, %v374_v14, %v428_v24 }
  0x99   :  { %482 = vadd.xlane.f32.xlu2 %v1597_v17  ;;  %v365_v4 = vpop.f32.mrf.mxu0 }
  0x9a   :  { %v366_v33 = vadd.f32 %v1590_v16, %v365_v4 }
  0x9b   :  { %v375_v18 = vpop.f32.mrf.mxu1 }
  0x9c   :  { %v376_v39 = vadd.f32 %v1590_v16, %v375_v18  ;;  %v425_v45 = vmul.f32 128.0, %v366_v33  ;;  %vm408_vm8 = vcmp.ge.f32.partialorder %v366_v33, 0.0  ;;  %v462_v18 = vlaneseq }
  0x9e   :  { %vm412_vm4 = vcmp.ge.f32.partialorder %v376_v39, 0.0  ;;  %v429_v19 = vmul.f32 128.0, %v376_v39  ;;  %v1621_v48 = vsel %vm408_vm8, %v366_v33, %v425_v45  ;;  %vm867_vm8 = vcmask 1041409  }
  0xa0   :  { %v388_v20 = vpop.f32.mrf.mxu2  ;;  %v1601_v22 = vsel %vm412_vm4, %v376_v39, %v429_v19  ;;  %v463_v19 = vshrl.u32 %v462_v18, 7 }
  0xa1   :  { %v389_v36 = vadd.f32 %v1590_v16, %v388_v20  ;;  %484 = vadd.xlane.f32.xlu1 %v1601_v22  ;;  %v464_v20 = vstv %s461_s26 }
  0xa2   :  { %vm465_vm3 = vcmp.lt.s32.totalorder %v463_v19, %v464_v20 }
  0xa3   :  { %vm417_vm5 = vcmp.ge.f32.partialorder %v389_v36, 0.0  ;;  %v434_v25 = vmul.f32 128.0, %v389_v36  ;;  %v378_v26 = vpop.f32.mrf.mxu1  ;;  %v368_v44 = vpop.f32.mrf.mxu0 }
  0xa4   :  { %v369_v46 = vadd.f32 %v1590_v16, %v368_v44  ;;  %v379_v29 = vadd.f32 %v1590_v16, %v378_v26  ;;  %v1310_v26 = vmov 0.0  }
  0xa5   :  { %v393_v27 = vpop.f32.mrf.mxu3  ;;  %v1605_v28 = vsel %vm417_vm5, %v389_v36, %v434_v25 }
  0xa6   :  { %v394_v40 = vadd.f32 %v1590_v16, %v393_v27  ;;  %494 = vadd.xlane.f32.xlu2 %v1605_v28  ;;  %v426_v52 = vmul.f32 128.0, %v369_v46  ;;  %vm409_vm10 = vcmp.ge.f32.partialorder %v369_v46, 0.0  ;;  %vm413_vm11 = vcmp.ge.f32.partialorder %v379_v29, 0.0 }
  0xa7   :  { %v430_v57 = vmul.f32 128.0, %v379_v29  ;;  %v1666_v27 = vsel %vm465_vm3, 1.0, %v1310_v26 }
  0xa8   :  { %v390_v23 = vpop.f32.mrf.mxu2  ;;  %vm419_vm6 = vcmp.ge.f32.partialorder %v394_v40, 0.0  ;;  %v436_v30 = vmul.f32 128.0, %v394_v40  ;;  %v1627_v59 = vsel %vm409_vm10, %v369_v46, %v426_v52  ;;  %vm871_vm10 = vcmask 1043459  }
  0xa9   :  { %v391_v31 = vadd.f32 %v1590_v16, %v390_v23  ;;  %v1636_v32 = vsel %vm413_vm11, %v379_v29, %v430_v57  ;;  %vm873_vm11 = vcmask 1044484  }
  0xaa   :  { %v1611_v37 = vsel %vm419_vm6, %v394_v40, %v436_v30 }
  0xab   :  { %498 = vadd.xlane.f32.xlu0 %v1611_v37  ;;  %vm418_vm7 = vcmp.ge.f32.partialorder %v391_v31, 0.0  ;;  %v435_v38 = vmul.f32 128.0, %v391_v31  ;;  %v380_v43 = vpop.f32.mrf.mxu1  ;;  %v370_v55 = vpop.f32.mrf.mxu0 }
  0xac   :  { %v381_v60 = vadd.f32 %v1590_v16, %v380_v43  ;;  %v371_v62 = vadd.f32 %v1590_v16, %v370_v55 }
  0xad   :  { %v395_v42 = vpop.f32.mrf.mxu3  ;;  %v1614_v3 = vsel %vm418_vm7, %v391_v31, %v435_v38 }
  0xae   :  { %v396_v21 = vadd.f32 %v1590_v16, %v395_v42  ;;  %496 = vadd.xlane.f32.xlu1 %v1614_v3  ;;  %v431_v1 = vmul.f32 128.0, %v381_v60  ;;  %vm414_vm14 = vcmp.ge.f32.partialorder %v381_v60, 0.0  ;;  %v427_v2 = vmul.f32 128.0, %v371_v62 }
  0xaf   :  { %vm410_vm15 = vcmp.ge.f32.partialorder %v371_v62, 0.0 }
  0xb0   :  { %vm420_vm9 = vcmp.ge.f32.partialorder %v396_v21, 0.0  ;;  %v437_v34 = vmul.f32 128.0, %v396_v21  ;;  %v1642_v7 = vsel %vm414_vm14, %v381_v60, %v431_v1  ;;  %v1647_v51 = vsel %vm410_vm15, %v371_v62, %v427_v2 }
  0xb1   :  { %vm879_vm14 = vcmask 1047559   ;;  %vm891_vm15 = vcmask 7168  }
  0xb2   :  { %v1619_v47 = vsel %vm420_vm9, %v396_v21, %v437_v34  ;;  %vm869_vm9 = vcmask 1042434  }
  0xb3   :  { %500 = vadd.xlane.f32.xlu2 %v1619_v47  ;;  %476 = vadd.xlane.f32.xlu0 %v1621_v48  ;;  %v383_v49 = vpop.f32.mrf.mxu1 }
  0xb4   :  { %v384_v54 = vadd.f32 %v1590_v16, %v383_v49 }
  0xb5   :  { %v398_v53 = vpop.f32.mrf.mxu3 }
  0xb6   :  { %v399_v56 = vadd.f32 %v1590_v16, %v398_v53  ;;  %v432_v50 = vmul.f32 128.0, %v384_v54  ;;  %vm415_vm13 = vcmp.ge.f32.partialorder %v384_v54, 0.0 }
  0xb8   :  { %vm421_vm12 = vcmp.ge.f32.partialorder %v399_v56, 0.0  ;;  %v438_v58 = vmul.f32 128.0, %v399_v56  ;;  %v1639_v5 = vsel %vm415_vm13, %v384_v54, %v432_v50  ;;  %vm877_vm13 = vcmask 1046534  }
  0xba   :  { %v1631_v61 = vsel %vm421_vm12, %v399_v56, %v438_v58  ;;  %vm875_vm12 = vcmask 1045509  }
  0xbb   :  { %502 = vadd.xlane.f32.xlu1 %v1631_v61  ;;  %478 = vadd.xlane.f32.xlu2 %v1627_v59  ;;  %v385_v0 = vpop.f32.mrf.mxu1 }
  0xbc   :  { %486 = vadd.xlane.f32.xlu0 %v1636_v32  ;;  %v386_v6 = vadd.f32 %v1590_v16, %v385_v0 }
  0xbd   :  { %v400_v63 = vpop.f32.mrf.mxu3 }
  0xbe   :  { %v401_v41 = vadd.f32 %v1590_v16, %v400_v63  ;;  %v433_v8 = vmul.f32 128.0, %v386_v6  ;;  %vm416_vm0 = vcmp.ge.f32.partialorder %v386_v6, 0.0 }
  0xc0   :  { %v439_v10 = vmul.f32 128.0, %v401_v41  ;;  %v1650_v11 = vsel %vm416_vm0, %v386_v6, %v433_v8  ;;  %vm422_vm1 = vcmp.ge.f32.partialorder %v401_v41, 0.0  ;;  %vm894_vm0 = vcmask 0  }
  0xc2   :  { %v1654_v13 = vsel %vm422_vm1, %v401_v41, %v439_v10 }
  0xc3   :  { %490 = vadd.xlane.f32.xlu1 %v1639_v5  ;;  %488 = vadd.xlane.f32.xlu2 %v1642_v7 }
  0xc4   :  { %480 = vadd.xlane.f32.xlu0 %v1647_v51 }
  0xc5   :  { %v403_v9 = vpop.f32.mrf.mxu3 }
  0xc6   :  { %v404_v12 = vadd.f32 %v1590_v16, %v403_v9  ;;  %v627_v16 = vstv %s469_s28 }
  0xc7   :  { %1304 = vrcp.f32 %v627_v16  ;;  %vm633_vm4 = vweird.f32 %v627_v16  ;;  %v639_v38 = vand.u32 2147483648, %v627_v16  ;;  %v637_v44 = vand.u32 2147483647, %v627_v16 }
  0xc8   :  { %v440_v14 = vmul.f32 128.0, %v404_v12  ;;  %vm423_vm2 = vcmp.ge.f32.partialorder %v404_v12, 0.0 }
  0xc9   :  { %v640_v34 = vor.u32 1.1754944e-38, %v639_v38  ;;  %vm638_vm7 = vcmp.eq.f32.partialorder %v637_v44, 8.507059e+37 }
  0xca   :  { %v1657_v24 = vsel %vm423_vm2, %v404_v12, %v440_v14 }
  0xcb   :  { %492 = vadd.xlane.f32.xlu1 %v1650_v11 }
  0xcc   :  { %504 = vadd.xlane.f32.xlu0 %v1654_v13 }
  0xcd   :  { %v405_v35 = vpop.f32.mrf.mxu3  ;;  %v1305_v39 = vpop.eup %1304 }
  0xce   :  { %v629_v36 = vmul.f32 %v1305_v39, %v627_v16  ;;  %vm634_vm5 = vweird.f32 %v1305_v39 }
  0xcf   :  { %vm635_vm6 = vmor %vm633_vm4, %vm634_vm5 }
  0xd0   :  { %v630_v25 = vsub.f32 1.0, %v629_v36 }
  0xd2   :  { %v631_v23 = vmul.f32 %v1305_v39, %v630_v25 }
  0xd3   :  { %506 = vadd.xlane.f32.xlu1 %v1657_v24 }
  0xd4   :  { %v632_v21 = vadd.f32 %v1305_v39, %v631_v23 }
  0xd6   :  { %v636_v52 = vsel %vm635_vm6, %v1305_v39, %v632_v21 }
  0xd7   :  { %v1670_v55 = vsel %vm638_vm7, %v640_v34, %v636_v52 }
 0x10a   :  { %v475_v40 = vpop.xlane.xlu0 %474 }
 0x10b   :  { %v508_v4 = vmul.f32 %v1666_v27, %v475_v40 }
 0x10c   :  { %v483_v30 = vpop.xlane.xlu2 %482 }
 0x10d   :  { %v512_v31 = vmul.f32 %v1666_v27, %v483_v30  ;;  %v525_v33 = vrot.slane %v508_v4, 4 }
 0x10f   :  { %v549_v43 = vrot.slane %v512_v31, 4  ;;  %v526_v42 = vadd.f32 %v525_v33, %v508_v4 }
 0x111   :  { %v550_v45 = vadd.f32 %v549_v43, %v512_v31  ;;  %v527_v46 = vrot.slane %v526_v42, 2 }
 0x113   :  { %v551_v29 = vrot.slane %v550_v45, 2  ;;  %v528_v49 = vadd.f32 %v527_v46, %v526_v42 }
 0x114   :  { %v485_v57 = vpop.xlane.xlu1 %484 }
 0x115   :  { %v552_v53 = vadd.f32 %v551_v29, %v550_v45  ;;  %v529_v56 = vrot.slane %v528_v49, 1  ;;  %v513_v60 = vmul.f32 %v1666_v27, %v485_v57 }
 0x117   :  { %v553_v58 = vrot.slane %v552_v53, 1  ;;  %v530_v54 = vadd.f32 %v529_v56, %v528_v49  ;;  %v555_v6 = vrot.slane %v513_v60, 4 }
 0x119   :  { %v495_v62 = vpop.xlane.xlu2 %494  ;;  %v554_v50 = vadd.f32 %v553_v58, %v552_v53  ;;  %v1674_v63 = vmul.f32 %v1670_v55, %v530_v54  ;;  %v556_v16 = vadd.f32 %v555_v6, %v513_v60 }
 0x11a   :  { %v518_v0 = vmul.f32 %v1666_v27, %v495_v62 }
 0x11b   :  { %v1678_v1 = vmul.f32 %v1670_v55, %v554_v50  ;;  %v659_v2 = vsub.f32 %v1594_v15, %v1674_v63  ;;  %v557_v25 = vrot.slane %v556_v16, 2 }
 0x11c   :  { %v585_v41 = vrot.slane %v518_v0, 4 }
 0x11d   :  { %v663_v8 = vsub.f32 %v1597_v17, %v1678_v1  ;;  %v676_v9 = vmul.f32 %v659_v2, %v659_v2  ;;  %v558_v43 = vadd.f32 %v557_v25, %v556_v16 }
 0x11e   :  { %v586_v10 = vadd.f32 %v585_v41, %v518_v0  ;;  %v499_v12 = vpop.xlane.xlu0 %498 }
 0x11f   :  { %v520_v14 = vmul.f32 %v1666_v27, %v499_v12  ;;  %v680_v35 = vmul.f32 %v663_v8, %v663_v8  ;;  %693 = vadd.xlane.f32.xlu2 %v676_v9  ;;  %v559_v53 = vrot.slane %v558_v43, 1 }
 0x120   :  { %v587_v18 = vrot.slane %v586_v10, 2 }
 0x121   :  { %v597_v39 = vrot.slane %v520_v14, 4  ;;  %v497_v19 = vpop.xlane.xlu1 %496  ;;  %701 = vadd.xlane.f32.xlu1 %v680_v35  ;;  %v560_v9 = vadd.f32 %v559_v53, %v558_v43 }
 0x122   :  { %v588_v20 = vadd.f32 %v587_v18, %v586_v10  ;;  %v519_v15 = vmul.f32 %v1666_v27, %v497_v19 }
 0x123   :  { %v598_v36 = vadd.f32 %v597_v39, %v520_v14 }
 0x124   :  { %v589_v26 = vrot.slane %v588_v20, 1  ;;  %v591_v31 = vrot.slane %v519_v15, 4 }
 0x125   :  { %v599_v40 = vrot.slane %v598_v36, 2 }
 0x126   :  { %v501_v17 = vpop.xlane.xlu2 %500  ;;  %v477_v4 = vpop.xlane.xlu0 %476  ;;  %v590_v23 = vadd.f32 %v589_v26, %v588_v20  ;;  %v592_v34 = vadd.f32 %v591_v31, %v519_v15  ;;  %v1701_v15 = vmul.f32 %v1670_v55, %v560_v9 }
 0x127   :  { %v600_v30 = vadd.f32 %v599_v40, %v598_v36  ;;  %v521_v33 = vmul.f32 %v1666_v27, %v501_v17  ;;  %v509_v38 = vmul.f32 %v1666_v27, %v477_v4 }
 0x128   :  { %v1689_v42 = vmul.f32 %v1670_v55, %v590_v23  ;;  %v593_v50 = vrot.slane %v592_v34, 2 }
 0x129   :  { %v601_v21 = vrot.slane %v600_v30, 1  ;;  %v603_v44 = vrot.slane %v521_v33, 4  ;;  %v531_v45 = vrot.slane %v509_v38, 4 }
 0x12a   :  { %v669_v46 = vsub.f32 %v1605_v28, %v1689_v42  ;;  %v594_v18 = vadd.f32 %v593_v50, %v592_v34 }
 0x12b   :  { %v604_v29 = vadd.f32 %v603_v44, %v521_v33  ;;  %v532_v49 = vadd.f32 %v531_v45, %v509_v38  ;;  %v602_v52 = vadd.f32 %v601_v21, %v600_v30 }
 0x12c   :  { %v686_v56 = vmul.f32 %v669_v46, %v669_v46  ;;  %v595_v30 = vrot.slane %v594_v18, 1 }
 0x12d   :  { %v605_v57 = vrot.slane %v604_v29, 2  ;;  %v533_v58 = vrot.slane %v532_v49, 2  ;;  %v1694_v54 = vmul.f32 %v1670_v55, %v602_v52  ;;  %v664_v52 = vsub.f32 %v1601_v22, %v1701_v15 }
 0x12e   :  { %v503_v60 = vpop.xlane.xlu1 %502  ;;  %v479_v62 = vpop.xlane.xlu2 %478  ;;  %713 = vadd.xlane.f32.xlu1 %v686_v56 }
 0x12f   :  { %v606_v0 = vadd.f32 %v605_v57, %v604_v29  ;;  %v534_v2 = vadd.f32 %v533_v58, %v532_v49  ;;  %v510_v6 = vmul.f32 %v1666_v27, %v479_v62  ;;  %v487_v28 = vpop.xlane.xlu0 %486  ;;  %v671_v8 = vsub.f32 %v1611_v37, %v1694_v54 }
 0x130   :  { %v514_v41 = vmul.f32 %v1666_v27, %v487_v28  ;;  %v522_v25 = vmul.f32 %v1666_v27, %v503_v60  ;;  %v681_v28 = vmul.f32 %v664_v52, %v664_v52 }
 0x131   :  { %v607_v10 = vrot.slane %v606_v0, 1  ;;  %v535_v12 = vrot.slane %v534_v2, 1  ;;  %v537_v14 = vrot.slane %v510_v6, 4  ;;  %v688_v16 = vmul.f32 %v671_v8, %v671_v8 }
 0x132   :  { %v561_v35 = vrot.slane %v514_v41, 4  ;;  %v609_v34 = vrot.slane %v522_v25, 4 }
 0x133   :  { %v538_v39 = vadd.f32 %v537_v14, %v510_v6  ;;  %v608_v19 = vadd.f32 %v607_v10, %v606_v0  ;;  %v536_v20 = vadd.f32 %v535_v12, %v534_v2  ;;  %717 = vadd.xlane.f32.xlu2 %v688_v16  ;;  %v596_v2 = vadd.f32 %v595_v30, %v594_v18 }
 0x134   :  { %v562_v36 = vadd.f32 %v561_v35, %v514_v41  ;;  %v610_v41 = vadd.f32 %v609_v34, %v522_v25 }
 0x135   :  { %v539_v26 = vrot.slane %v538_v39, 2  ;;  %v1705_v37 = vmul.f32 %v1670_v55, %v608_v19  ;;  %v1708_v40 = vmul.f32 %v1670_v55, %v536_v20  ;;  %v1724_v20 = vmul.f32 %v1670_v55, %v596_v2 }
 0x136   :  { %v563_v17 = vrot.slane %v562_v36, 2  ;;  %v491_v4 = vpop.xlane.xlu1 %490  ;;  %v489_v23 = vpop.xlane.xlu2 %488 }
 0x137   :  { %v540_v31 = vadd.f32 %v539_v26, %v538_v39  ;;  %v516_v33 = vmul.f32 %v1666_v27, %v491_v4  ;;  %v515_v38 = vmul.f32 %v1666_v27, %v489_v23  ;;  %v481_v43 = vpop.xlane.xlu0 %480  ;;  %v672_v45 = vsub.f32 %v1619_v47, %v1705_v37 }
 0x138   :  { %v564_v21 = vadd.f32 %v563_v17, %v562_v36  ;;  %v511_v44 = vmul.f32 %v1666_v27, %v481_v43  ;;  %v660_v46 = vsub.f32 %v1621_v48, %v1708_v40  ;;  %v611_v17 = vrot.slane %v610_v41, 2 }
 0x139   :  { %v573_v29 = vrot.slane %v516_v33, 4  ;;  %v567_v49 = vrot.slane %v515_v38, 4  ;;  %v689_v57 = vmul.f32 %v672_v45, %v672_v45  ;;  %v541_v60 = vrot.slane %v540_v31, 1 }
 0x13a   :  { %v565_v53 = vrot.slane %v564_v21, 1  ;;  %v543_v56 = vrot.slane %v511_v44, 4  ;;  %v677_v58 = vmul.f32 %v660_v46, %v660_v46  ;;  %v612_v34 = vadd.f32 %v611_v17, %v610_v41 }
 0x13b   :  { %v574_v62 = vadd.f32 %v573_v29, %v516_v33  ;;  %v568_v50 = vadd.f32 %v567_v49, %v515_v38  ;;  %719 = vadd.xlane.f32.xlu1 %v689_v57  ;;  %v542_v16 = vadd.f32 %v541_v60, %v540_v31  ;;  %v868_v29 = vsel %vm867_vm8, %v1708_v40, %v1674_v63 }
 0x13c   :  { %v544_v0 = vadd.f32 %v543_v56, %v511_v44  ;;  %695 = vadd.xlane.f32.xlu0 %v677_v58  ;;  %v566_v47 = vadd.f32 %v565_v53, %v564_v21 }
 0x13d   :  { %v575_v48 = vrot.slane %v574_v62, 2  ;;  %v569_v6 = vrot.slane %v568_v50, 2  ;;  %v644_v31 = vmul.f32 %v1670_v55, %v542_v16 }
 0x13e   :  { %v545_v8 = vrot.slane %v544_v0, 2  ;;  %v493_v22 = vpop.xlane.xlu1 %492  ;;  %v648_v9 = vmul.f32 %v1670_v55, %v566_v47 }
 0x13f   :  { %v576_v10 = vadd.f32 %v575_v48, %v574_v62  ;;  %v570_v12 = vadd.f32 %v569_v6, %v568_v50  ;;  %v517_v14 = vmul.f32 %v1666_v27, %v493_v22  ;;  %v505_v35 = vpop.xlane.xlu0 %504  ;;  %v870_v58 = vsel %vm869_vm9, %v644_v31, %v868_v29 }
 0x140   :  { %v546_v39 = vadd.f32 %v545_v8, %v544_v0  ;;  %v523_v19 = vmul.f32 %v1666_v27, %v505_v35  ;;  %v665_v18 = vsub.f32 %v1636_v32, %v648_v9  ;;  %v670_v32 = vsub.f32 %v1614_v3, %v1724_v20 }
 0x141   :  { %v577_v36 = vrot.slane %v576_v10, 1  ;;  %v571_v25 = vrot.slane %v570_v12, 1  ;;  %v579_v26 = vrot.slane %v517_v14, 4  ;;  %v613_v48 = vrot.slane %v612_v34, 1 }
 0x142   :  { %v547_v4 = vrot.slane %v546_v39, 1  ;;  %v615_v23 = vrot.slane %v523_v19, 4  ;;  %v682_v30 = vmul.f32 %v665_v18, %v665_v18  ;;  %v687_v62 = vmul.f32 %v670_v32, %v670_v32 }
 0x143   :  { %v580_v33 = vadd.f32 %v579_v26, %v517_v14  ;;  %v578_v38 = vadd.f32 %v577_v36, %v576_v10  ;;  %v572_v46 = vadd.f32 %v571_v25, %v570_v12  ;;  %v614_v16 = vadd.f32 %v613_v48, %v612_v34 }
 0x144   :  { %v616_v43 = vadd.f32 %v615_v23, %v523_v19  ;;  %703 = vadd.xlane.f32.xlu0 %v681_v28  ;;  %705 = vadd.xlane.f32.xlu2 %v682_v30  ;;  %v548_v21 = vadd.f32 %v547_v4, %v546_v39 }
 0x145   :  { %v581_v44 = vrot.slane %v580_v33, 2  ;;  %v650_v45 = vmul.f32 %v1670_v55, %v578_v38  ;;  %v649_v40 = vmul.f32 %v1670_v55, %v572_v46 }
 0x146   :  { %v617_v49 = vrot.slane %v616_v43, 2  ;;  %v507_v52 = vpop.xlane.xlu1 %506  ;;  %v645_v53 = vmul.f32 %v1670_v55, %v548_v21 }
 0x147   :  { %v582_v56 = vadd.f32 %v581_v44, %v580_v33  ;;  %v524_v57 = vmul.f32 %v1666_v27, %v507_v52  ;;  %v667_v3 = vsub.f32 %v1639_v5, %v650_v45  ;;  %v666_v12 = vsub.f32 %v1642_v7, %v649_v40 }
 0x148   :  { %v618_v60 = vadd.f32 %v617_v49, %v616_v43  ;;  %v662_v50 = vsub.f32 %v1647_v51, %v645_v53  ;;  %v872_v0 = vsel %vm871_vm10, %v645_v53, %v870_v58 }
 0x149   :  { %v583_v47 = vrot.slane %v582_v56, 1  ;;  %v621_v2 = vrot.slane %v524_v57, 4  ;;  %v684_v63 = vmul.f32 %v667_v3, %v667_v3  ;;  %v874_v41 = vsel %vm873_vm11, %v1678_v1, %v872_v0 }
 0x14a   :  { %v619_v6 = vrot.slane %v618_v60, 1  ;;  %v679_v28 = vmul.f32 %v662_v50, %v662_v50  ;;  %v876_v8 = vsel %vm875_vm12, %v1701_v15, %v874_v41  ;;  %v661_v1 = vsub.f32 %v1627_v59, %v644_v31 }
 0x14b   :  { %v622_v5 = vadd.f32 %v621_v2, %v524_v57  ;;  %709 = vadd.xlane.f32.xlu1 %v684_v63  ;;  %v584_v51 = vadd.f32 %v583_v47, %v582_v56  ;;  %v878_v22 = vsel %vm877_vm13, %v648_v9, %v876_v8  ;;  %v683_v7 = vmul.f32 %v666_v12, %v666_v12 }
 0x14c   :  { %715 = vadd.xlane.f32.xlu0 %v687_v62  ;;  %699 = vadd.xlane.f32.xlu2 %v679_v28  ;;  %v880_v14 = vsel %vm879_vm14, %v649_v40, %v878_v22  ;;  %v620_v39 = vadd.f32 %v619_v6, %v618_v60  ;;  %v678_v17 = vmul.f32 %v661_v1, %v661_v1 }
 0x14d   :  { %v623_v10 = vrot.slane %v622_v5, 2  ;;  %v651_v35 = vmul.f32 %v1670_v55, %v584_v51  ;;  %892 = vst.msk [vmem:[#allocation2] sm:$0xff] %vm891_vm15, %v880_v14  ;;  %v656_v59 = vmul.f32 %v1670_v55, %v614_v16 }
 0x14e   :  { %v657_v23 = vmul.f32 %v1670_v55, %v620_v39 }
 0x14f   :  { %v624_v19 = vadd.f32 %v623_v10, %v622_v5  ;;  %v668_v15 = vsub.f32 %v1650_v11, %v651_v35  ;;  %v881_v18 = vsel %vm867_vm8, %v651_v35, %v650_v45  ;;  %v673_v31 = vsub.f32 %v1631_v61, %v656_v59 }
 0x150   :  { %v882_v9 = vsel %vm869_vm9, %v1689_v42, %v881_v18 }
 0x151   :  { %v625_v36 = vrot.slane %v624_v19, 1  ;;  %v685_v25 = vmul.f32 %v668_v15, %v668_v15  ;;  %v883_v26 = vsel %vm871_vm10, %v1724_v20, %v882_v9 }
 0x152   :  { %v884_v4 = vsel %vm873_vm11, %v1694_v54, %v883_v26  ;;  %v674_v54 = vsub.f32 %v1654_v13, %v657_v23 }
 0x153   :  { %707 = vadd.xlane.f32.xlu1 %v683_v7  ;;  %v885_v11 = vsel %vm875_vm12, %v1705_v37, %v884_v4  ;;  %v626_v30 = vadd.f32 %v625_v36, %v624_v19  ;;  %v690_v37 = vmul.f32 %v673_v31, %v673_v31 }
 0x154   :  { %697 = vadd.xlane.f32.xlu0 %v678_v17  ;;  %711 = vadd.xlane.f32.xlu2 %v685_v25  ;;  %v886_v42 = vsel %vm877_vm13, %v656_v59, %v885_v11  ;;  %v1242_v38 = vld [vmem:[#allocation2] sm:$0xff]  ;;  %v691_v43 = vmul.f32 %v674_v54, %v674_v54 }
 0x155   :  { %v887_v20 = vsel %vm879_vm14, %v657_v23, %v886_v42  ;;  %v658_v33 = vmul.f32 %v1670_v55, %v626_v30  ;;  %1246 = vst.msk [vmem:[%s1857_s4] sm:$0xff] %vm891_vm15, %v1242_v38 }
 0x156   :  { %893 = vst.msk [vmem:[#allocation2 + $0x8] sm:$0xff] %vm891_vm15, %v887_v20 }
 0x157   :  { %895 = vst.msk [vmem:[#allocation2 + $0x10] sm:$0x1] %vm894_vm0, %v658_v33  ;;  %v675_v55 = vsub.f32 %v1657_v24, %v658_v33 }
 0x159   :  { %v692_v61 = vmul.f32 %v675_v55, %v675_v55 }
 0x15c   :  { %721 = vadd.xlane.f32.xlu0 %v690_v37  ;;  %723 = vadd.xlane.f32.xlu2 %v691_v43 }
 0x15d   :  { %v1243_v32 = vld [vmem:[#allocation2 + $0x8] sm:$0xff] }
 0x15e   :  { %v1244_v21 = vld [vmem:[#allocation2 + $0x10] sm:$0x1]  ;;  %1247 = vst.msk [vmem:[%s1857_s4 + $0x8] sm:$0xff] %vm891_vm15, %v1243_v32 }
 0x15f   :  { %1249 = vst.msk [vmem:[%s1857_s4 + $0x10] sm:$0x1] %vm894_vm0, %v1244_v21  ;;  %s1241_s4 = smul.f32 128.0, %s1240_s11 }
 0x161   :  { %v1792_v28 = vstv %s1241_s4 }
 0x162   :  { %1306 = vrcp.f32 %v1792_v28  ;;  %vm1259_vm1 = vweird.f32 %v1792_v28 }
 0x164   :  { %725 = vadd.xlane.f32.xlu0 %v692_v61 }
 0x168   :  { %v1799_v42 = vpop.eup %1306 }
 0x169   :  { %vm1260_vm2 = vweird.f32 %v1799_v42 }
 0x16a   :  { %vm1261_vm3 = vmor %vm1259_vm1, %vm1260_vm2 }
 0x192   :  { %v694_v44 = vpop.xlane.xlu2 %693 }
 0x193   :  { %v727_v46 = vmul.f32 %v1666_v27, %v694_v44 }
 0x194   :  { %v702_v13 = vpop.xlane.xlu1 %701 }
 0x195   :  { %v731_v29 = vmul.f32 %v1666_v27, %v702_v13  ;;  %v744_v49 = vrot.slane %v727_v46, 4 }
 0x197   :  { %v768_v57 = vrot.slane %v731_v29, 4  ;;  %v745_v3 = vadd.f32 %v744_v49, %v727_v46 }
 0x199   :  { %v769_v2 = vadd.f32 %v768_v57, %v731_v29  ;;  %v746_v63 = vrot.slane %v745_v3, 2 }
 0x19b   :  { %v770_v8 = vrot.slane %v769_v2, 2  ;;  %v747_v51 = vadd.f32 %v746_v63, %v745_v3 }
 0x19d   :  { %v771_v36 = vadd.f32 %v770_v8, %v769_v2  ;;  %v748_v7 = vrot.slane %v747_v51, 1 }
 0x19f   :  { %v772_v37 = vrot.slane %v771_v36, 1  ;;  %v749_v43 = vadd.f32 %v748_v7, %v747_v51 }
 0x1a1   :  { %v714_v45 = vpop.xlane.xlu1 %713 }
 0x1a2   :  { %v737_v53 = vmul.f32 %v1666_v27, %v714_v45 }
 0x1a4   :  { %v804_v0 = vrot.slane %v737_v53, 4 }
 0x1a6   :  { %v718_v34 = vpop.xlane.xlu2 %717  ;;  %v805_v41 = vadd.f32 %v804_v0, %v737_v53 }
 0x1a7   :  { %v739_v56 = vmul.f32 %v1666_v27, %v718_v34  ;;  %v1255_v34 = vmul.f32 %v1799_v42, %v1792_v28 }
 0x1a8   :  { %v806_v19 = vrot.slane %v805_v41, 2 }
 0x1a9   :  { %v816_v47 = vrot.slane %v739_v56, 4  ;;  %v1256_v63 = vsub.f32 1.0, %v1255_v34 }
 0x1aa   :  { %v807_v20 = vadd.f32 %v806_v19, %v805_v41 }
 0x1ab   :  { %v817_v5 = vadd.f32 %v816_v47, %v739_v56 }
 0x1ad   :  { %v818_v15 = vrot.slane %v817_v5, 2 }
 0x1ae   :  { %v720_v58 = vpop.xlane.xlu1 %719 }
 0x1af   :  { %v696_v24 = vpop.xlane.xlu0 %695  ;;  %v740_v40 = vmul.f32 %v1666_v27, %v720_v58  ;;  %v819_v33 = vadd.f32 %v818_v15, %v817_v5 }
 0x1b0   :  { %v728_v52 = vmul.f32 %v1666_v27, %v696_v24  ;;  %v808_v24 = vrot.slane %v807_v20, 1 }
 0x1b1   :  { %v822_v10 = vrot.slane %v740_v40, 4  ;;  %v820_v29 = vrot.slane %v819_v33, 1 }
 0x1b2   :  { %v750_v60 = vrot.slane %v728_v52, 4 }
 0x1b3   :  { %v823_v17 = vadd.f32 %v822_v10, %v740_v40  ;;  %v773_v40 = vadd.f32 %v772_v37, %v771_v36  ;;  %v821_v10 = vadd.f32 %v820_v29, %v819_v33 }
 0x1b4   :  { %v751_v48 = vadd.f32 %v750_v60, %v728_v52 }
 0x1b5   :  { %v824_v32 = vrot.slane %v823_v17, 2 }
 0x1b6   :  { %v752_v12 = vrot.slane %v751_v48, 2 }
 0x1b7   :  { %v704_v62 = vpop.xlane.xlu0 %703  ;;  %v706_v50 = vpop.xlane.xlu2 %705  ;;  %v1806_v58 = vadd.f32 %v824_v32, %v823_v17 }
 0x1b8   :  { %v732_v6 = vmul.f32 %v1666_v27, %v704_v62  ;;  %v733_v22 = vmul.f32 %v1666_v27, %v706_v50  ;;  %v753_v59 = vadd.f32 %v752_v12, %v751_v48  ;;  %v809_v48 = vadd.f32 %v808_v24, %v807_v20 }
 0x1b9   :  { %v826_v12 = vrot.slane %v1806_v58, 1 }
 0x1ba   :  { %v774_v35 = vrot.slane %v732_v6, 4  ;;  %v780_v25 = vrot.slane %v733_v22, 4  ;;  %v754_v55 = vrot.slane %v753_v59, 1 }
 0x1bc   :  { %v775_v11 = vadd.f32 %v774_v35, %v732_v6  ;;  %v781_v38 = vadd.f32 %v780_v25, %v733_v22  ;;  %v755_v60 = vadd.f32 %v754_v55, %v753_v59 }
 0x1be   :  { %v710_v14 = vpop.xlane.xlu1 %709  ;;  %v776_v61 = vrot.slane %v775_v11, 2  ;;  %v782_v53 = vrot.slane %v781_v38, 2 }
 0x1bf   :  { %v735_v1 = vmul.f32 %v1666_v27, %v710_v14  ;;  %v716_v16 = vpop.xlane.xlu0 %715  ;;  %v700_v39 = vpop.xlane.xlu2 %699 }
 0x1c0   :  { %v738_v18 = vmul.f32 %v1666_v27, %v716_v16  ;;  %v730_v9 = vmul.f32 %v1666_v27, %v700_v39  ;;  %v777_v0 = vadd.f32 %v776_v61, %v775_v11  ;;  %v783_v5 = vadd.f32 %v782_v53, %v781_v38 }
 0x1c1   :  { %v792_v26 = vrot.slane %v735_v1, 4 }
 0x1c2   :  { %v810_v4 = vrot.slane %v738_v18, 4  ;;  %v762_v23 = vrot.slane %v730_v9, 4  ;;  %v778_v16 = vrot.slane %v777_v0, 1 }
 0x1c3   :  { %v793_v30 = vadd.f32 %v792_v26, %v735_v1  ;;  %v913_v1 = vsel %vm867_vm8, %v755_v60, %v749_v43  ;;  %v784_v26 = vrot.slane %v783_v5, 1 }
 0x1c4   :  { %v811_v31 = vadd.f32 %v810_v4, %v738_v18  ;;  %v763_v54 = vadd.f32 %v762_v23, %v730_v9  ;;  %v1257_v18 = vmul.f32 %v1799_v42, %v1256_v63  ;;  %v779_v32 = vadd.f32 %v778_v16, %v777_v0 }
 0x1c5   :  { %v794_v13 = vrot.slane %v793_v30, 2  ;;  %v785_v34 = vadd.f32 %v784_v26, %v783_v5 }
 0x1c6   :  { %v708_v21 = vpop.xlane.xlu1 %707  ;;  %v812_v56 = vrot.slane %v811_v31, 2  ;;  %v764_v57 = vrot.slane %v763_v54, 2  ;;  %v1258_v38 = vadd.f32 %v1799_v42, %v1257_v18 }
 0x1c7   :  { %v734_v44 = vmul.f32 %v1666_v27, %v708_v21  ;;  %v698_v45 = vpop.xlane.xlu0 %697  ;;  %v712_v46 = vpop.xlane.xlu2 %711  ;;  %v795_v47 = vadd.f32 %v794_v13, %v793_v30 }
 0x1c8   :  { %v729_v49 = vmul.f32 %v1666_v27, %v698_v45  ;;  %v736_v52 = vmul.f32 %v1666_v27, %v712_v46  ;;  %v813_v8 = vadd.f32 %v812_v56, %v811_v31  ;;  %v765_v51 = vadd.f32 %v764_v57, %v763_v54 }
 0x1c9   :  { %v786_v3 = vrot.slane %v734_v44, 4  ;;  %v796_v39 = vrot.slane %v795_v47, 1 }
 0x1ca   :  { %v756_v62 = vrot.slane %v729_v49, 4  ;;  %v798_v50 = vrot.slane %v736_v52, 4  ;;  %v814_v17 = vrot.slane %v813_v8, 1  ;;  %v766_v59 = vrot.slane %v765_v51, 1 }
 0x1cb   :  { %v787_v2 = vadd.f32 %v786_v3, %v734_v44  ;;  %v797_v33 = vadd.f32 %v796_v39, %v795_v47 }
 0x1cc   :  { %v757_v6 = vadd.f32 %v756_v62, %v729_v49  ;;  %v799_v41 = vadd.f32 %v798_v50, %v736_v52  ;;  %v815_v55 = vadd.f32 %v814_v17, %v813_v8  ;;  %v767_v21 = vadd.f32 %v766_v59, %v765_v51 }
 0x1cd   :  { %v788_v22 = vrot.slane %v787_v2, 2  ;;  %v1263_v49 = vand.u32 2147483647, %v1792_v28  ;;  %v1265_v50 = vand.u32 2147483648, %v1792_v28 }
 0x1ce   :  { %v758_v14 = vrot.slane %v757_v6, 2  ;;  %v800_v35 = vrot.slane %v799_v41, 2 }
 0x1cf   :  { %v722_v19 = vpop.xlane.xlu0 %721  ;;  %v724_v15 = vpop.xlane.xlu2 %723  ;;  %v789_v4 = vadd.f32 %v788_v22, %v787_v2  ;;  %v1266_v51 = vor.u32 1.1754944e-38, %v1265_v50  ;;  %vm1264_vm4 = vcmp.eq.f32.partialorder %v1263_v49, 8.507059e+37 }
 0x1d0   :  { %v759_v9 = vadd.f32 %v758_v14, %v757_v6  ;;  %v801_v36 = vadd.f32 %v800_v35, %v799_v41  ;;  %v741_v7 = vmul.f32 %v1666_v27, %v722_v19  ;;  %v742_v25 = vmul.f32 %v1666_v27, %v724_v15 }
 0x1d1   :  { %v790_v61 = vrot.slane %v789_v4, 1  ;;  %v827_v6 = vadd.f32 %v826_v12, %v1806_v58  ;;  %v1262_v58 = vsel %vm1261_vm3, %v1799_v42, %v1258_v38 }
 0x1d2   :  { %v760_v23 = vrot.slane %v759_v9, 1  ;;  %v802_v11 = vrot.slane %v801_v36, 1  ;;  %v828_v30 = vrot.slane %v741_v7, 4  ;;  %v834_v20 = vrot.slane %v742_v25, 4 }
 0x1d3   :  { %v791_v60 = vadd.f32 %v790_v61, %v789_v4  ;;  %v1267_v28 = vsel %vm1264_vm4, %v1266_v51, %v1262_v58 }
 0x1d4   :  { %v761_v31 = vadd.f32 %v760_v23, %v759_v9  ;;  %v803_v54 = vadd.f32 %v802_v11, %v801_v36  ;;  %v829_v37 = vadd.f32 %v828_v30, %v741_v7  ;;  %v835_v43 = vadd.f32 %v834_v20, %v742_v25 }
 0x1d6   :  { %v914_v13 = vsel %vm869_vm9, %v761_v31, %v913_v1  ;;  %v920_v44 = vsel %vm867_vm8, %v803_v54, %v797_v33  ;;  %v830_v45 = vrot.slane %v829_v37, 2  ;;  %v836_v46 = vrot.slane %v835_v43, 2 }
 0x1d7   :  { %v915_v24 = vsel %vm871_vm10, %v767_v21, %v914_v13  ;;  %v921_v29 = vsel %vm869_vm9, %v809_v48, %v920_v44  ;;  %v726_v52 = vpop.xlane.xlu0 %725 }
 0x1d8   :  { %v916_v53 = vsel %vm873_vm11, %v773_v40, %v915_v24  ;;  %v922_v56 = vsel %vm871_vm10, %v815_v55, %v921_v29  ;;  %v831_v57 = vadd.f32 %v830_v45, %v829_v37  ;;  %v837_v3 = vadd.f32 %v836_v46, %v835_v43 }
 0x1d9   :  { %v917_v62 = vsel %vm875_vm12, %v779_v32, %v916_v53  ;;  %v743_v0 = vmul.f32 %v1666_v27, %v726_v52  ;;  %v923_v63 = vsel %vm873_vm11, %v821_v10, %v922_v56 }
 0x1da   :  { %v918_v47 = vsel %vm877_vm13, %v785_v34, %v917_v62  ;;  %v832_v2 = vrot.slane %v831_v57, 1  ;;  %v838_v48 = vrot.slane %v837_v3, 1  ;;  %v924_v8 = vsel %vm875_vm12, %v827_v6, %v923_v63 }
 0x1db   :  { %v919_v40 = vsel %vm879_vm14, %v791_v60, %v918_v47  ;;  %v840_v41 = vrot.slane %v743_v0, 4 }
 0x1dc   :  { %930 = vst.msk [vmem:[#allocation3] sm:$0xff] %vm891_vm15, %v919_v40  ;;  %v833_v5 = vadd.f32 %v832_v2, %v831_v57  ;;  %v839_v27 = vadd.f32 %v838_v48, %v837_v3 }
 0x1dd   :  { %v841_v22 = vadd.f32 %v840_v41, %v743_v0 }
 0x1de   :  { %v925_v10 = vsel %vm877_vm13, %v833_v5, %v924_v8 }
 0x1df   :  { %v926_v12 = vsel %vm879_vm14, %v839_v27, %v925_v10  ;;  %v842_v14 = vrot.slane %v841_v22, 2 }
 0x1e0   :  { %931 = vst.msk [vmem:[#allocation3 + $0x8] sm:$0xff] %vm891_vm15, %v926_v12 }
 0x1e1   :  { %v843_v35 = vadd.f32 %v842_v14, %v841_v22 }
 0x1e3   :  { %v844_v1 = vrot.slane %v843_v35, 1  ;;  %v1250_v16 = vld [vmem:[#allocation3] sm:$0xff] }
 0x1e4   :  { %v1268_v39 = vmul.f32 %v1267_v28, %v1250_v16 }
 0x1e5   :  { %v845_v19 = vadd.f32 %v844_v1, %v843_v35 }
 0x1e6   :  { %1271 = vst.msk [vmem:[%s1858_s5] sm:$0xff] %vm891_vm15, %v1268_v39 }
 0x1e7   :  { %v1251_v15 = vld [vmem:[#allocation3 + $0x8] sm:$0xff]  ;;  %932 = vst.msk [vmem:[#allocation3 + $0x10] sm:$0x1] %vm894_vm0, %v845_v19 }
 0x1e8   :  { %v1269_v42 = vmul.f32 %v1267_v28, %v1251_v15 }
 0x1ea   :  { %1272 = vst.msk [vmem:[%s1858_s5 + $0x8] sm:$0xff] %vm891_vm15, %v1269_v42 }
 0x1ee   :  { %v1252_v18 = vld [vmem:[#allocation3 + $0x10] sm:$0x1] }
 0x1ef   :  { %v1270_v9 = vmul.f32 %v1267_v28, %v1252_v18 }
 0x1f1   :  { %1273 = vst.msk [vmem:[%s1858_s5 + $0x10] sm:$0x1] %vm894_vm0, %v1270_v9 }

</bundles_post_ra>
